<compile_context>
chip_gen: v7x
topology: tpu7x:2x2x1
jax: 0.10.0
libtpu: 0.0.40
codegen_flags: <defaults>
</compile_context>

<pallas_src>
import functools

import jax
import jax.numpy as jnp
import numpy as np
from jax.experimental import pallas as pl
from jax.experimental.pallas import tpu as pltpu


def _round_up(n, m):
    return ((n + m - 1) // m) * m


def _rbf_kan_kernel(x_ref, c_ref, w_ref, *rest, num_grids, input_dim,
                    inv_denom, k_pad, use_base_update):
    if use_base_update:
        b_ref, o_ref, feat_ref = rest
    else:
        o_ref, feat_ref = rest

    d = input_dim
    k_spline = num_grids * d

    # Build the (bt, k_pad) feature block once per batch tile; the output-
    # feature grid axis (axis 1, innermost) reuses it.
    @pl.when(pl.program_id(1) == 0)
    def _build_features():
        x = x_ref[...].astype(jnp.float32)
        xs = x * inv_denom                                    # hoisted 1/denom

        # Replicate xs to (bt, G*D).  Build 128-lane vreg-aligned blocks when
        # possible so most copies are whole-vreg moves rather than masked
        # D-lane inserts.
        reps = 128 // d if (d <= 128 and 128 % d == 0) else 1
        if reps > 1 and num_grids % reps == 0:
            blk = jnp.concatenate([xs] * reps, axis=-1)       # (bt, 128)
            xt = jnp.concatenate([blk] * (num_grids // reps), axis=-1)
        else:
            xt = jnp.concatenate([xs] * num_grids, axis=-1)   # (bt, G*D)

        diff = xt - c_ref[...].astype(jnp.float32)            # (1, G*D) bcast
        feat_ref[:, :k_spline] = jnp.exp(-(diff * diff))      # single EUP sweep

        if use_base_update:
            silu = x * jax.nn.sigmoid(x)                      # (bt, D)
            rem = k_pad - k_spline                            # >= d
            if rem % d == 0:
                # Fill the whole tail (base + pad columns) with repeated SiLU
                # copies: lane-dense store; the pad rows of the fused weight
                # are zero so the extra copies are inert in the matmul.
                feat_ref[:, k_spline:] = jnp.concatenate(
                    [silu] * (rem // d), axis=-1)
            else:
                feat_ref[:, k_spline:k_spline + d] = silu
                if k_pad > k_spline + d:
                    feat_ref[:, k_spline + d:] = jnp.zeros(
                        (x.shape[0], k_pad - k_spline - d), jnp.float32)
        elif k_pad > k_spline:
            feat_ref[:, k_spline:] = jnp.zeros(
                (x.shape[0], k_pad - k_spline), jnp.float32)

    # One fused MXU matmul per (batch tile, output tile), K = k_pad.
    acc = jnp.dot(feat_ref[...], w_ref[...].astype(jnp.float32),
                  preferred_element_type=jnp.float32)         # (bt, to)
    if use_base_update:
        acc = acc + b_ref[...].astype(jnp.float32)            # (1, to) bcast
    o_ref[...] = acc.astype(o_ref.dtype)


def prepare_rbf_kan_params(grid, spline_weight, base_weight=None,
                           base_bias=None, *, grid_min=-2.0, grid_max=2.0,
                           num_grids=8, use_base_update=True, o_tile=512):
    """Hoisted, call-once parameter re-layout (cache the result at init)."""
    K_in, O = spline_weight.shape
    assert K_in % num_grids == 0
    D = K_in // num_grids
    G = num_grids

    denom = (grid_max - grid_min) / (num_grids - 1)
    inv_denom = 1.0 / denom

    # spline_weight row d*G + g  ->  row g*D + d (lane-dense basis layout).
    w_spline = jnp.transpose(spline_weight.reshape(D, G, O),
                             (1, 0, 2)).reshape(G * D, O)
    if use_base_update:
        # Stack base linear (as (D, O)) under the spline weight so the base
        # path shares the single fused matmul.
        w_full = jnp.concatenate(
            [w_spline, base_weight.T.astype(w_spline.dtype)], axis=0)
        bias = base_bias.reshape(1, O).astype(jnp.float32)
    else:
        w_full = w_spline
        bias = None

    k_logical = w_full.shape[0]
    k_pad = _round_up(k_logical, 128)            # lane-aligned contraction

    o_pad = _round_up(O, 128)                    # lane-dense output
    to = min(o_tile, o_pad)                      # output-feature tile
    o_pad = _round_up(o_pad, to)

    if k_pad != k_logical or o_pad != O:
        w_full = jnp.pad(w_full, ((0, k_pad - k_logical), (0, o_pad - O)))
    if bias is not None and o_pad != O:
        bias = jnp.pad(bias, ((0, 0), (0, o_pad - O)))

    # Pre-scaled, flattened centers: c_flat[0, g*D + d] = grid[g] / denom.
    c_flat = jnp.repeat(grid.astype(jnp.float32) * inv_denom,
                        D).reshape(1, G * D)

    return dict(w_full=w_full, bias=bias, c_flat=c_flat,
                input_dim=D, output_dim=O, num_grids=G, inv_denom=inv_denom,
                k_pad=k_pad, o_pad=o_pad, o_tile=to,
                use_base_update=use_base_update)


def _vmem_limit_bytes(required_bytes):
    try:
        cap = getattr(pltpu.get_tpu_info(), "vmem_capacity_bytes", None)
    except Exception:
        cap = None
    if not cap:
        cap = 64 * 1024 * 1024                   # conservative (v7x per-TC)
    limit = int(cap * 0.7)                       # generation-aware headroom
    # Never request less than what this tiling actually needs (plus margin).
    return max(limit, min(int(required_bytes * 1.5) + (2 << 20),
                          int(cap * 0.9)))


def rbf_kan_forward(params, x, *, batch_tile=256):
    """x: (B, D) -> (B, O).  `params` from prepare_rbf_kan_params()."""
    B, D = x.shape
    assert D == params["input_dim"]
    G = params["num_grids"]
    O = params["output_dim"]
    k_pad, o_pad, to = params["k_pad"], params["o_pad"], params["o_tile"]
    use_base = params["use_base_update"]

    # Balanced batch tiling: waste capped at one 8-row sublane tile; keep
    # >=2 (>=4 for larger B) grid steps so the "parallel" axis can shard
    # across TensorCores and x/out DMA overlaps compute.
    if B >= 64:
        min_steps = 4
    elif B >= 16:
        min_steps = 2
    else:
        min_steps = 1
    nb = max(pl.cdiv(B, batch_tile), min_steps)
    bt = _round_up(pl.cdiv(B, nb), 8)
    b_pad = _round_up(B, bt)
    nb = b_pad // bt
    x_p = jnp.pad(x, ((0, b_pad - B), (0, 0))) if b_pad != B else x

    no = o_pad // to

    kernel = functools.partial(
        _rbf_kan_kernel, num_grids=G, input_dim=D,
        inv_denom=params["inv_denom"], k_pad=k_pad, use_base_update=use_base)

    # Single-buffer operands whose block index never changes.
    resident = pl.Buffered(1)
    w_mode = pl.Buffered(1) if no == 1 else None

    in_specs = [
        pl.BlockSpec((bt, D), lambda i, j: (i, 0)),
        pl.BlockSpec((1, G * D), lambda i, j: (0, 0), pipeline_mode=resident),
        pl.BlockSpec((k_pad, to), lambda i, j: (0, j), pipeline_mode=w_mode),
    ]
    operands = [x_p, params["c_flat"], params["w_full"]]
    if use_base:
        in_specs.append(
            pl.BlockSpec((1, to), lambda i, j: (0, j), pipeline_mode=w_mode))
        operands.append(params["bias"])

    w_bufs = 1 if no == 1 else 2
    vmem_need = 4 * (bt * k_pad                  # feature scratch
                     + 2 * bt * D                # x tiles (double buffered)
                     + 2 * bt * to               # output tiles
                     + w_bufs * (k_pad * to + to)
                     + G * D)

    out = pl.pallas_call(
        kernel,
        out_shape=jax.ShapeDtypeStruct((b_pad, o_pad), x.dtype),
        grid_spec=pltpu.PrefetchScalarGridSpec(
            num_scalar_prefetch=0,
            grid=(nb, no),
            in_specs=in_specs,
            out_specs=pl.BlockSpec((bt, to), lambda i, j: (i, j)),
            scratch_shapes=[pltpu.VMEM((bt, k_pad), jnp.float32)],
        ),
        compiler_params=pltpu.CompilerParams(
            dimension_semantics=("parallel", "arbitrary"),
            vmem_limit_bytes=_vmem_limit_bytes(vmem_need)),
    )(*operands)

    return out[:B, :O]


def rbf_kan_layer(x, grid, spline_weight, base_weight=None, base_bias=None, *,
                  grid_min=-2.0, grid_max=2.0, num_grids=8,
                  use_base_update=True, batch_tile=256, o_tile=512):
    """One-shot convenience wrapper.  In real use, call
    prepare_rbf_kan_params() once at init and rbf_kan_forward() per step."""
    params = prepare_rbf_kan_params(
        grid, spline_weight, base_weight, base_bias,
        grid_min=grid_min, grid_max=grid_max, num_grids=num_grids,
        use_base_update=use_base_update, o_tile=o_tile)
    return rbf_kan_forward(params, x, batch_tile=batch_tile)


def _reference(x, grid, spline_weight, base_weight, base_bias,
               grid_min=-2.0, grid_max=2.0, num_grids=8, use_base_update=True):
    denom = (grid_max - grid_min) / (num_grids - 1)
    basis = jnp.exp(-(((x[..., None] - grid) / denom) ** 2))      # (B, D, G)
    ret = basis.reshape(x.shape[0], -1) @ spline_weight           # (B, O)
    if use_base_update:
        silu = x * jax.nn.sigmoid(x)
        ret = ret + silu @ base_weight.T + base_bias
    return ret


if __name__ == "__main__":
    # Small deterministic config consistent with RBFKANLayer(input_dim, output_dim)
    batch = 16
    input_dim = 32
    output_dim = 64
    num_grids = 8
    grid_min, grid_max = -2.0, 2.0
    spline_weight_init_scale = 0.1

    key = jax.random.PRNGKey(0)
    kx, kw, kbw, kbb = jax.random.split(key, 4)

    x = jax.random.normal(kx, (batch, input_dim), dtype=jnp.float32)

    # Parameters (deterministic, matching __init__ shapes):
    grid = jnp.linspace(grid_min, grid_max, num_grids, dtype=jnp.float32)
    spline_weight = (jax.random.normal(
        kw, (input_dim * num_grids, output_dim), dtype=jnp.float32)
        * spline_weight_init_scale)
    # nn.Linear(input_dim, output_dim): weight (O, D), bias (O,)
    bound = 1.0 / np.sqrt(input_dim)
    base_weight = jax.random.uniform(
        kbw, (output_dim, input_dim), dtype=jnp.float32,
        minval=-bound, maxval=bound)
    base_bias = jax.random.uniform(
        kbb, (output_dim,), dtype=jnp.float32, minval=-bound, maxval=bound)

    # Parameter re-layout hoisted out of the per-call path (call once at init).
    params = prepare_rbf_kan_params(
        grid, spline_weight, base_weight, base_bias,
        grid_min=grid_min, grid_max=grid_max, num_grids=num_grids,
        use_base_update=True)

    out = rbf_kan_forward(params, x, batch_tile=256)
    out = jax.block_until_ready(out)

    ref = _reference(x, grid, spline_weight, base_weight, base_bias,
                     grid_min, grid_max, num_grids, True)
    np.testing.assert_allclose(np.asarray(out), np.asarray(ref),
                               rtol=1e-5, atol=1e-5)
    print("KERNEL_OK")
</pallas_src>

<mosaic_0001>
module attributes {stable_mosaic.version = 11 : i64} {
  func.func @_rbf_kan_kernel(%arg0: i32, %arg1: i32, %arg2: memref<8x32xf32, #tpu.memory_space<vmem>>, %arg3: memref<1x256xf32, #tpu.memory_space<vmem>>, %arg4: memref<384x128xf32, #tpu.memory_space<vmem>>, %arg5: memref<1x128xf32, #tpu.memory_space<vmem>>, %arg6: memref<8x128xf32, #tpu.memory_space<vmem>>, %arg7: memref<8x384xf32, #tpu.memory_space<vmem>>) attributes {dimension_semantics = [#tpu.dimension_semantics<parallel>, #tpu.dimension_semantics<arbitrary>], iteration_bounds = array<i64: 2, 1>, scalar_prefetch = 0 : i64, scratch_operands = 1 : i64, tpu.core_type = #tpu.core_type<tc>, window_params = [{transform_indices = @transform_0, window_bounds = array<i64: 8, 32>}, {pipeline_mode = #tpu.pipeline_mode<synchronous>, transform_indices = @transform_1, window_bounds = array<i64: 1, 256>}, {pipeline_mode = #tpu.pipeline_mode<synchronous>, transform_indices = @transform_2, window_bounds = array<i64: 384, 128>}, {pipeline_mode = #tpu.pipeline_mode<synchronous>, transform_indices = @transform_3, window_bounds = array<i64: 1, 128>}, {transform_indices = @transform_4, window_bounds = array<i64: 8, 128>}]} {
    %c0_i32 = arith.constant 0 : i32
    %0 = arith.cmpi eq, %arg1, %c0_i32 : i32
    %1 = arith.extui %0 : i1 to i32
    %c0_i32_0 = arith.constant 0 : i32
    %2 = arith.cmpi ne, %1, %c0_i32_0 : i32
    scf.if %2 {
      %c0_8 = arith.constant 0 : index
      %c0_9 = arith.constant 0 : index
      %10 = vector.load %arg2[%c0_8, %c0_9] : memref<8x32xf32, #tpu.memory_space<vmem>>, vector<8x32xf32>
      %cst_10 = arith.constant 1.750000e+00 : f32
      %11 = vector.broadcast %cst_10 : f32 to vector<8x32xf32>
      %12 = arith.mulf %10, %11 : vector<8x32xf32>
      %13 = tpu.concatenate %12, %12, %12, %12 in 1 : vector<8x32xf32>, vector<8x32xf32>, vector<8x32xf32>, vector<8x32xf32> -> vector<8x128xf32>
      %14 = tpu.concatenate %13, %13 in 1 : vector<8x128xf32>, vector<8x128xf32> -> vector<8x256xf32>
      %c0_11 = arith.constant 0 : index
      %c0_12 = arith.constant 0 : index
      %15 = vector.load %arg3[%c0_11, %c0_12] : memref<1x256xf32, #tpu.memory_space<vmem>>, vector<1x256xf32>
      %16 = vector.broadcast %15 : vector<1x256xf32> to vector<8x256xf32>
      %17 = arith.subf %14, %16 : vector<8x256xf32>
      %18 = arith.mulf %17, %17 : vector<8x256xf32>
      %cst_13 = arith.constant 0.000000e+00 : f32
      %19 = vector.broadcast %cst_13 : f32 to vector<8x256xf32>
      %20 = arith.subf %19, %18 : vector<8x256xf32>
      %21 = math.exp %20 : vector<8x256xf32>
      %c0_14 = arith.constant 0 : index
      %c0_15 = arith.constant 0 : index
      %22 = vector.load %arg7[%c0_14, %c0_15] : memref<8x384xf32, #tpu.memory_space<vmem>>, vector<8x256xf32>
      tpu.vector_store %arg7[%c0_14, %c0_15], %21 {strides = array<i32>} : memref<8x384xf32, #tpu.memory_space<vmem>>, vector<8x256xf32>,
      %23 = arith.negf %10 : vector<8x32xf32>
      %24 = math.exp %23 : vector<8x32xf32>
      %cst_16 = arith.constant 1.000000e+00 : f32
      %25 = vector.broadcast %cst_16 : f32 to vector<8x32xf32>
      %26 = arith.addf %25, %24 : vector<8x32xf32>
      %27 = arith.divf %25, %26 : vector<8x32xf32>
      %28 = arith.mulf %10, %27 : vector<8x32xf32>
      %29 = tpu.concatenate %28, %28, %28, %28 in 1 : vector<8x32xf32>, vector<8x32xf32>, vector<8x32xf32>, vector<8x32xf32> -> vector<8x128xf32>
      %c0_17 = arith.constant 0 : index
      %c256 = arith.constant 256 : index
      %30 = vector.load %arg7[%c0_17, %c256] : memref<8x384xf32, #tpu.memory_space<vmem>>, vector<8x128xf32>
      tpu.vector_store %arg7[%c0_17, %c256], %29 {strides = array<i32>} : memref<8x384xf32, #tpu.memory_space<vmem>>, vector<8x128xf32>,
    } else {
    }
    %c0 = arith.constant 0 : index
    %c0_1 = arith.constant 0 : index
    %3 = vector.load %arg7[%c0, %c0_1] : memref<8x384xf32, #tpu.memory_space<vmem>>, vector<8x384xf32>
    %c0_2 = arith.constant 0 : index
    %c0_3 = arith.constant 0 : index
    %4 = vector.load %arg4[%c0_2, %c0_3] : memref<384x128xf32, #tpu.memory_space<vmem>>, vector<384x128xf32>
    %cst = arith.constant dense<0.000000e+00> : vector<8x128xf32>
    %5 = tpu.matmul %3, %4, %cst {dimension_numbers = #tpu.dot_dimension_numbers<[1], [0], [0], [1], [0, 0, 1, 1], [], []>} : vector<8x384xf32>, vector<384x128xf32>, vector<8x128xf32> -> vector<8x128xf32>
    %c0_4 = arith.constant 0 : index
    %c0_5 = arith.constant 0 : index
    %6 = vector.load %arg5[%c0_4, %c0_5] : memref<1x128xf32, #tpu.memory_space<vmem>>, vector<1x128xf32>
    %7 = vector.broadcast %6 : vector<1x128xf32> to vector<8x128xf32>
    %8 = arith.addf %5, %7 : vector<8x128xf32>
    %c0_6 = arith.constant 0 : index
    %c0_7 = arith.constant 0 : index
    %9 = vector.load %arg6[%c0_6, %c0_7] : memref<8x128xf32, #tpu.memory_space<vmem>>, vector<8x128xf32>
    tpu.vector_store %arg6[%c0_6, %c0_7], %8 {strides = array<i32>} : memref<8x128xf32, #tpu.memory_space<vmem>>, vector<8x128xf32>,
    return
  }
  func.func @transform_0(%arg0: i32, %arg1: i32) -> (i32, i32) {
    %c0_i32 = arith.constant 0 : i32
    %c0_i32_0 = arith.constant 0 : i32
    return %arg0, %c0_i32 : i32, i32
  }
  func.func @transform_1(%arg0: i32, %arg1: i32) -> (i32, i32) {
    %c0_i32 = arith.constant 0 : i32
    %c0_i32_0 = arith.constant 0 : i32
    %c0_i32_1 = arith.constant 0 : i32
    return %c0_i32, %c0_i32_0 : i32, i32
  }
  func.func @transform_2(%arg0: i32, %arg1: i32) -> (i32, i32) {
    %c0_i32 = arith.constant 0 : i32
    %c0_i32_0 = arith.constant 0 : i32
    return %c0_i32, %arg1 : i32, i32
  }
  func.func @transform_3(%arg0: i32, %arg1: i32) -> (i32, i32) {
    %c0_i32 = arith.constant 0 : i32
    %c0_i32_0 = arith.constant 0 : i32
    return %c0_i32, %arg1 : i32, i32
  }
  func.func @transform_4(%arg0: i32, %arg1: i32) -> (i32, i32) {
    %c0_i32 = arith.constant 0 : i32
    return %arg0, %arg1 : i32, i32
  }
}

</mosaic_0001>

<bundles_post_ra>
// kernel: tpu_custom_call.1
= control target key start
LH: loop header
LB: loop body
LE: loop exit
PB: predicated region body
PF: predicated region fallthrough
CT: control target
= control target key end

     0   :  { %9 = vsyncpa [#allocation4], 0  ;;  %s1334_s0 = inlined_call_operand.hbm [shape: f32[16,32], index: 0, kind: input, shape index: {}]   ;;  %s1335_s1 = inlined_call_operand.vmem [shape: f32[1,256], index: 1, kind: input, shape index: {}]   ;;  %s1336_s2 = inlined_call_operand.hbm [shape: f32[384,128], index: 2, kind: input, shape index: {}]   ;;  %s1337_s3 = inlined_call_operand.vmem [shape: f32[1,128], index: 3, kind: input, shape index: {}]   ;;  %s1338_s4 = inlined_call_operand.hbm [shape: f32[16,128], index: 4, kind: output, shape index: {}]  }
   0x1   :  { %11 = vsyncpa [#allocation4 + $0x1], 0 }
   0x2   :  { %12 = vsyncpa [#allocation7], 0 }
   0x3   :  { %13 = vsyncpa [#allocation5], 0 }
   0x4   :  { %15 = vsyncpa [#allocation5 + $0x1], 0  ;;  %s1079_s15 = smov 0   ;;  %s1081_s16 = smov 0  }
   0x5   :  { %s1083_s17 = smov 0   ;;  %s1085_s18 = smov 0  }
   0x6   :  { %s1087_s19 = smov 0   ;;  %s1089_s20 = smov 0  }
   0x7 LB: > { %s647_s21 = sadd.s32 4294967295, %s1041_s20   ;;  %s648_s22 = sadd.s32 4294967294, %s1041_s20   ;;  %s1041_s20 = sphi %s1089_s20, %s21_s20   ;;  %s1037_s19 = sphi %s1087_s19, %s1362_s19   ;;  %s1033_s18 = sphi %s1085_s18, %s1361_s18   ;;  %s1029_s17 = sphi %s1083_s17, %s1360_s17   ;;  %s1025_s16 = sphi %s1081_s16, %s1359_s16   ;;  %s1021_s15 = sphi %s1079_s15, %s1358_s15  }
   0x8   : > { %p53_p0 = scmp.ne.s32.totalorder %s1025_s16, %s1021_s15  ;;  %p1113_p1 = scmp.eq.s32.totalorder %s647_s21, 0 }
   0x9   : > { %p1117_p2 = scmp.eq.s32.totalorder %s647_s21, 1  ;;  %p158_p3 = scmp.eq.s32.totalorder %s648_s22, 1 }
   0xa   : > { %s1343_s23 = scalar_select %p1113_p1, 1, 0 }
   0xb   : > { %s1344_s24 = scalar_select %p1117_p2, 1, 0 }
   0xc   : > { %p1123_p4 = por %p1113_p1, %p53_p0  ;;  %p649_p5 = scmp.ge.s32.totalorder %s1041_s20, 1 }
   0xd   : > { %p1128_p6 = por %p158_p3, %p53_p0  ;;  %p165_p7 = scmp.lt.s32.totalorder %s1041_s20, 3 }
   0xe   : > { %s1345_s25 = scalar_select %p1123_p4, 1, 0 }
   0xf   : > { %s1346_s26 = scalar_select %p1128_p6, 1, 0 }
  0x10   : > { %p1133_p8 = pnand %p649_p5, %p165_p7  ;;  %s1043_s28 = smov [#allocation6]  }
  0x11   : > { %s182_s29 = sshll.u32 %s1043_s28, 4  ;;  %s33_s5 = sadd.s32 1, %s1037_s19  ;;  %s183_s29 = int_to_ptr.vmem [resolvable:$true] %s182_s29 }
  0x12   : > { %s1347_s27 = scalar_select %p1133_p8, 1, 0 }
  0x13   : > { %p816_p9 = pneg %p1133_p8  ;;  %s897_s8 = scalar_lea.hbm %s1336_s2, 6144 }
  0x14   : > { %p898_p12 = scmp.ne.s32.totalorder %s1336_s2, %s897_s8  ;;  %p904_p5 = scmp.lt.u32.totalorder %s897_s8, %s1336_s2 }
  0x15   : > { %p1142_p11 = pnand %p816_p9, %p1113_p1 }
  0x17   : > { %p899_p13 = pneg %p1142_p11 }
  0x19   : > { %p900_p0 = pnand %p899_p13, %p898_p12 }
  0x1b   : > { %p901_p3 = pneg %p900_p0 }
  0x1d   : > { %p906_p7 = pnand %p904_p5, %p901_p3 }
  0x1f   : > { %909 = shalt.err (!%p906_p7)
}
  0x20   : > { %s910_s13 = scalar_lea.vmem %s183_s29, 6144  ;;  %p918_p1 = scmp.lt.s32.totalorder %s183_s29, %s183_s29 }
  0x21   : > { %p911_p9 = scmp.ne.s32.totalorder %s183_s29, %s910_s13  ;;  %p919_p4 = scmp.lt.s32.totalorder %s910_s13, %s910_s13 }
  0x23   : > { %p913_p10 = pnand %p911_p9, %p899_p13  ;;  %p920_p8 = por %p919_p4, %p918_p1 }
  0x25   : > { %p914_p6 = pneg %p913_p10 }
  0x27   : > { %p921_p2 = pnand %p920_p8, %p914_p6 }
  0x29   : > { %924 = shalt.err (!%p921_p2)
}
  0x2a   : > { %s1044_s14 = smov 128   ;;  %s1045_s21 = smov 8  }
  0x2b   : > { %819 = dma.hbm_to_vmem [thread:$0]  (!%p1142_p11), %s1336_s2, 6144, %s183_s29, [#allocation7], %s1044_s14, %s1044_s14, %s1045_s21  }
  0x2c   : > { %p35_p1 = scmp.ge.s32.totalorder %s33_s5, 2  ;;  %s40_s6 = sadd.s32 1, %s1029_s17 }
  0x2d   : > { %p47_p2 = scmp.ne.s32.totalorder %s1029_s17, %s1025_s16  ;;  %p48_p4 = scmp.eq.s32.totalorder %s1041_s20, 0 }
  0x2e   : > { %s1364_s5 = smov (%p35_p1, %s33_s5), 0  ;;  %p1350_p8 = scmp.ne.s32.totalorder %s1344_s24, 0 }
  0x2f   : > { %p1169_p6 = por %p48_p4, %p47_p2  ;;  %s37_s30 = ssub.s32 %s1037_s19, %s1364_s5 }
  0x30   : > { %p1175_p10 = por %p1350_p8, %p47_p2  ;;  %p829_p12 = scmp.lt.s32.totalorder %s1041_s20, 2 }
  0x31   : > { %p38_p11 = scmp.eq.s32.totalorder %s37_s30, 0  ;;  %s202_s29 = sand.u32 1, %s1029_s17  }
  0x32   : > { %s653_s9 = sshll.u32 %s202_s29, 3  ;;  %s654_s11 = sshll.u32 %s1037_s19, 7 }
  0x33   : > { %s1184_s10 = scalar_select %p38_p11, %s1029_s17, %s40_s6  }
  0x34   : > { %s1190_s14 = scalar_lea.hbm %s1334_s0, %s654_s11  ;;  %s206_s24 = scalar_lea.vmem [#allocation3], %s653_s9 }
  0x35   : > { %s213_s21 = sshll.u32 %s206_s24, 4  ;;  %p1196_p13 = pnand %p829_p12, %p1169_p6  ;;  %s1192_s21 = int_to_ptr.vmem [resolvable:$true] %s213_s21 }
  0x36   : > { %s203_s28 = scalar_lea.sflag [#allocation4], %s202_s29  ;;  %s925_s6 = scalar_lea.hbm %s1190_s14, 128 }
  0x37   : > { %p926_p0 = scmp.ne.s32.totalorder %s1190_s14, %s925_s6  ;;  %p927_p3 = pneg %p1196_p13 }
  0x38   : > { %s930_s11 = scalar_lea.hbm %s1334_s0, 256  ;;  %p931_p9 = scmp.lt.u32.totalorder %s1190_s14, %s1334_s0 }
  0x39   : > { %p928_p5 = pnand %p927_p3, %p926_p0  ;;  %p932_p1 = scmp.lt.u32.totalorder %s930_s11, %s925_s6 }
  0x3a   : > { %p934_p4 = scmp.lt.u32.totalorder %s925_s6, %s1190_s14 }
  0x3b   : > { %p929_p7 = pneg %p928_p5  ;;  %p933_p2 = por %p932_p1, %p931_p9 }
  0x3d   : > { %p935_p6 = por %p934_p4, %p933_p2 }
  0x3f   : > { %p936_p8 = pnand %p935_p6, %p929_p7 }
  0x41   : > { %939 = shalt.err (!%p936_p8)
}
  0x42   : > { %s940_s29 = scalar_lea.vmem %s1192_s21, 128  ;;  %s1046_s13 = smov [#allocation3]  }
  0x43   : > { %p941_p12 = scmp.ne.s32.totalorder %s1192_s21, %s940_s29  ;;  %s945_s24 = sshll.u32 %s1046_s13, 4  ;;  %s946_s24 = int_to_ptr.vmem [resolvable:$false] %s945_s24 }
  0x44   : > { %s947_s30 = scalar_lea.vmem %s946_s24, 256  ;;  %p948_p5 = scmp.lt.s32.totalorder %s1192_s21, %s946_s24 }
  0x45   : > { %p943_p11 = pnand %p941_p12, %p927_p3  ;;  %p949_p9 = scmp.lt.s32.totalorder %s947_s30, %s940_s29 }
  0x47   : > { %p944_p0 = pneg %p943_p11  ;;  %p950_p1 = por %p949_p9, %p948_p5 }
  0x49   : > { %p951_p2 = pnand %p950_p1, %p944_p0 }
  0x4b   : > { %954 = shalt.err (!%p951_p2)
}
  0x4c   : > { %823 = dma.hbm_to_vmem [thread:$0]  (!%p1196_p13), %s1190_s14, 128, %s1192_s21, %s203_s28  }
  0x4d   : > { %p1353_p7 = scmp.ne.s32.totalorder %s1347_s27, 0 }
  0x4e   : > { %s1228_s6 = sand.u32 (!%p1353_p7), 1, %s1025_s16   ;;  %p1354_p3 = scmp.ne.s32.totalorder (!%p1353_p7), %s1345_s25, 0 }
  0x4f   : > { %222 = sbr.rel (%p1353_p7) target bundleno = 468 (0x1d4), region = 36  ;;  %s656_s9 = sshll.u32 (!%p1353_p7), %s1228_s6, 3 }
  0x50   : > { %s225_s11 = scalar_lea.sflag (!%p1353_p7), [#allocation4], %s1228_s6  ;;  %s228_s7 = scalar_lea.vmem (!%p1353_p7), [#allocation3], %s656_s9 }
  0x56   : > { %1008 = dma.done.wait (%p1354_p3), %s225_s11, 128  }
  0x57   : > { %1010 = vsyncadd (%p1354_p3), %s225_s11, 4294967168  ;;  %p1355_p13 = scmp.ne.s32.totalorder %s1343_s23, 0 }
  0x59   : > { %1012 = dma.done.wait (%p1355_p13), [#allocation7], 6144  }
  0x5a   : > { %1014 = vsyncadd (%p1355_p13), [#allocation7], 4294961152  ;;  %v1047_v0 = vmov 0.0|0.0   ;;  %v1243_v1 = vld [vmem:[%s228_s7] sm:$0xff]  ;;  %v349_v2 = vld [vmem:[#allocation6 + $0x80] sm:$0xff]  ;;  %s1048_s23 = smov 32  }
  0x5b   : > { %784 = vmatprep.subr.bf16.mxu1 %v1047_v0  ;;  %v350_v3 = vld [vmem:[#allocation6 + $0x88] sm:$0xff]  ;;  %v1246_v4 = vmul.f32 1.75, %v1243_v1  ;;  %v659_v5 = vmul.f32 -1.442695, %v1243_v1  ;;  %v333_v7 = vld [vmem:[#allocation6] sm:$0xff]  ;;  %v351_v9 = vld [vmem:[#allocation6 + $0x90] sm:$0xff] }
  0x5c   : > { %v752_v6 = vpack.c.bf16 %v350_v3, %v349_v2  ;;  %v334_v8 = vld [vmem:[#allocation6 + $0x8] sm:$0xff]  ;;  %v352_v11 = vld [vmem:[#allocation6 + $0x98] sm:$0xff]  ;;  %v335_v12 = vld [vmem:[#allocation6 + $0x10] sm:$0xff]  ;;  %s1049_s25 = smov 96   ;;  %s1050_s27 = smov 64   ;;  %vm1051_vm0 = vmmov 0  }
  0x5d   : > { %v754_v10 = vpack.c.bf16 %v334_v8, %v333_v7  ;;  %v336_v13 = vld [vmem:[#allocation6 + $0x18] sm:$0xff]  ;;  %889 = vpow2.f32 %v659_v5  ;;  %270 = vrot.lane.b32.xlu0 %v1246_v4, %s1048_s23  ;;  %276 = vrot.lane.b32.xlu1 %v1246_v4, %s1049_s25  ;;  %v756_v14 = vpack.c.bf16 %v352_v11, %v351_v9  ;;  %v365_v15 = vld [vmem:[#allocation6 + $0x100] sm:$0xff]  ;;  %v366_v16 = vld [vmem:[#allocation6 + $0x108] sm:$0xff]  ;;  %v1052_v60 = vmov 0.0   ;;  %s662_s12 = sshll.u32 %s1033_s18, 7  ;;  %s259_s29 = scalar_lea.vmem [#allocation8], %s656_s9 }
  0x5e   : > { %v353_v17 = vld [vmem:[#allocation6 + $0xa0] sm:$0xff]  ;;  %753 = vmatprep.subr.bf16.mxu0 %v752_v6  ;;  %v785_v18 = vpack.c.bf16 %v366_v16, %v365_v15  ;;  %v354_v19 = vld [vmem:[#allocation6 + $0xa8] sm:$0xff]  ;;  %v758_v20 = vpack.c.bf16 %v336_v13, %v335_v12  ;;  %v367_v21 = vld [vmem:[#allocation6 + $0x110] sm:$0xff]  ;;  %749 = vmatprep.mubr.msk.f32.mxu1 %vm1051_vm0, %v1052_v60  ;;  %vm279_vm1 = vcmask 261120   ;;  %vm281_vm2 = vcmask 523264   ;;  %s544_s13 = sshll.u32 %s259_s29, 4  ;;  %s1285_s11 = scalar_lea.hbm %s1338_s4, %s662_s12  ;;  %s1287_s13 = int_to_ptr.vmem [resolvable:$true] %s544_s13 }
  0x5f   : > { %755 = vmatpush3.bf16.msra.mxu0 %v754_v10  ;;  %v368_v22 = vld [vmem:[#allocation6 + $0x118] sm:$0xff]  ;;  %v760_v23 = vpack.c.bf16 %v354_v19, %v353_v17  ;;  %v337_v24 = vld [vmem:[#allocation6 + $0x20] sm:$0xff]  ;;  %v338_v25 = vld [vmem:[#allocation6 + $0x28] sm:$0xff]  ;;  %vm283_vm3 = vcmask 785408   ;;  %s530_s7 = scalar_lea.sflag [#allocation5], %s1228_s6  ;;  %s955_s18 = scalar_lea.vmem %s1287_s13, 128 }
  0x60   : > { %757 = vmatprep.subr.bf16.mxu0 %v756_v14  ;;  %786 = vmatpush3.bf16.msra.mxu1 %v785_v18  ;;  %v788_v26 = vpack.c.bf16 %v368_v22, %v367_v21  ;;  %v355_v27 = vld [vmem:[#allocation6 + $0xb0] sm:$0xff]  ;;  %v356_v28 = vld [vmem:[#allocation6 + $0xb8] sm:$0xff]  ;;  %v369_v29 = vld [vmem:[#allocation6 + $0x120] sm:$0xff]  ;;  %v762_v31 = vpack.c.bf16 %v338_v25, %v337_v24  ;;  %p956_p4 = scmp.ne.s32.totalorder %s1287_s13, %s955_s18  ;;  %s1053_s9 = smov [#allocation8]  }
  0x61   : > { %273 = vrot.lane.b32.xlu0 %v1246_v4, %s1050_s27  ;;  %787 = vmatprep.subr.bf16.mxu1 %v1047_v0  ;;  %v370_v30 = vld [vmem:[#allocation6 + $0x128] sm:$0xff]  ;;  %v764_v32 = vpack.c.bf16 %v356_v28, %v355_v27  ;;  %v339_v33 = vld [vmem:[#allocation6 + $0x30] sm:$0xff]  ;;  %v340_v34 = vld [vmem:[#allocation6 + $0x38] sm:$0xff] }
  0x62   : > { %v791_v35 = vpack.c.bf16 %v370_v30, %v369_v29  ;;  %v357_v36 = vld [vmem:[#allocation6 + $0xc0] sm:$0xff]  ;;  %v358_v37 = vld [vmem:[#allocation6 + $0xc8] sm:$0xff]  ;;  %v371_v38 = vld [vmem:[#allocation6 + $0x130] sm:$0xff]  ;;  %v766_v41 = vpack.c.bf16 %v340_v34, %v339_v33  ;;  %p957_p6 = pnand %p956_p4, %p1175_p10 }
  0x63   : > { %759 = vmatpush3.bf16.msra.mxu0 %v758_v20  ;;  %v372_v39 = vld [vmem:[#allocation6 + $0x138] sm:$0xff]  ;;  %v768_v43 = vpack.c.bf16 %v358_v37, %v357_v36  ;;  %v341_v44 = vld [vmem:[#allocation6 + $0x40] sm:$0xff]  ;;  %v342_v45 = vld [vmem:[#allocation6 + $0x48] sm:$0xff] }
  0x64   : > { %761 = vmatprep.subr.bf16.mxu0 %v760_v23  ;;  %789 = vmatpush3.bf16.msra.mxu1 %v788_v26  ;;  %v794_v46 = vpack.c.bf16 %v372_v39, %v371_v38  ;;  %v359_v47 = vld [vmem:[#allocation6 + $0xd0] sm:$0xff]  ;;  %v360_v48 = vld [vmem:[#allocation6 + $0xd8] sm:$0xff]  ;;  %v373_v49 = vld [vmem:[#allocation6 + $0x140] sm:$0xff]  ;;  %v770_v51 = vpack.c.bf16 %v342_v45, %v341_v44  ;;  %p958_p8 = pneg %p957_p6 }
  0x65   : > { %790 = vmatprep.subr.bf16.mxu1 %v1047_v0  ;;  %v374_v50 = vld [vmem:[#allocation6 + $0x148] sm:$0xff]  ;;  %v772_v52 = vpack.c.bf16 %v360_v48, %v359_v47  ;;  %v343_v53 = vld [vmem:[#allocation6 + $0x50] sm:$0xff]  ;;  %v344_v54 = vld [vmem:[#allocation6 + $0x58] sm:$0xff] }
  0x66   : > { %v797_v55 = vpack.c.bf16 %v374_v50, %v373_v49  ;;  %v361_v56 = vld [vmem:[#allocation6 + $0xe0] sm:$0xff]  ;;  %v362_v57 = vld [vmem:[#allocation6 + $0xe8] sm:$0xff]  ;;  %v375_v58 = vld [vmem:[#allocation6 + $0x150] sm:$0xff]  ;;  %v774_v61 = vpack.c.bf16 %v344_v54, %v343_v53 }
  0x67   : > { %v890_v40 = vpop.eup %889  ;;  %763 = vmatpush3.bf16.msra.mxu0 %v762_v31  ;;  %v376_v59 = vld [vmem:[#allocation6 + $0x158] sm:$0xff]  ;;  %v776_v62 = vpack.c.bf16 %v362_v57, %v361_v56  ;;  %v345_v63 = vld [vmem:[#allocation6 + $0x60] sm:$0xff]  ;;  %v346_v3 = vld [vmem:[#allocation6 + $0x68] sm:$0xff] }
  0x68   : > { %v312_v42 = vadd.f32 1.0, %v890_v40  ;;  %765 = vmatprep.subr.bf16.mxu0 %v764_v32  ;;  %792 = vmatpush3.bf16.msra.mxu1 %v791_v35  ;;  %v800_v2 = vpack.c.bf16 %v376_v59, %v375_v58  ;;  %v377_v5 = vld [vmem:[#allocation6 + $0x160] sm:$0xff]  ;;  %v378_v6 = vld [vmem:[#allocation6 + $0x168] sm:$0xff]  ;;  %v363_v7 = vld [vmem:[#allocation6 + $0xf0] sm:$0xff]  ;;  %v778_v10 = vpack.c.bf16 %v346_v3, %v345_v63 }
  0x69   : > { %793 = vmatprep.subr.bf16.mxu1 %v1047_v0  ;;  %v364_v8 = vld [vmem:[#allocation6 + $0xf8] sm:$0xff]  ;;  %v347_v11 = vld [vmem:[#allocation6 + $0x70] sm:$0xff]  ;;  %v803_v12 = vpack.c.bf16 %v378_v6, %v377_v5 }
  0x6a   : > { %891 = vrcp.f32 %v312_v42  ;;  %v780_v14 = vpack.c.bf16 %v364_v8, %v363_v7  ;;  %v348_v15 = vld [vmem:[#allocation6 + $0x78] sm:$0xff]  ;;  %v379_v16 = vld [vmem:[#allocation6 + $0x170] sm:$0xff] }
  0x6b   : > { %767 = vmatpush3.bf16.msra.mxu0 %v766_v41  ;;  %v380_v17 = vld [vmem:[#allocation6 + $0x178] sm:$0xff]  ;;  %v782_v18 = vpack.c.bf16 %v348_v15, %v347_v11  ;;  %v285_v24 = vld [vmem:[%s1335_s1] sm:$0x3] }
  0x6c   : > { %769 = vmatprep.subr.bf16.mxu0 %v768_v43  ;;  %795 = vmatpush3.bf16.msra.mxu1 %v794_v46  ;;  %v806_v19 = vpack.c.bf16 %v380_v17, %v379_v16  ;;  %v660_v48 = vld [vmem:[%s1337_s3] ss:$0 sm:$0xff] }
  0x6d   : > { %796 = vmatprep.subr.bf16.mxu1 %v1047_v0 }
  0x6f   : > { %771 = vmatpush3.bf16.msra.mxu0 %v770_v51 }
  0x70   : > { %773 = vmatprep.subr.bf16.mxu0 %v772_v52  ;;  %798 = vmatpush3.bf16.msra.mxu1 %v797_v55 }
  0x71   : > { %799 = vmatprep.subr.bf16.mxu1 %v1047_v0 }
  0x73   : > { %775 = vmatpush3.bf16.msra.mxu0 %v774_v61 }
  0x74   : > { %v892_v9 = vpop.eup %891  ;;  %777 = vmatprep.subr.bf16.mxu0 %v776_v62  ;;  %801 = vmatpush3.bf16.msra.mxu1 %v800_v2 }
  0x75   : > { %v315_v13 = vmul.f32 %v892_v9, %v1243_v1  ;;  %802 = vmatprep.subr.bf16.mxu1 %v1047_v0  ;;  %v287_v1 = vlaneseq }
  0x77   : > { %317 = vrot.lane.b32.xlu1 %v315_v13, %s1048_s23  ;;  %320 = vrot.lane.b32.xlu0 %v315_v13, %s1050_s27  ;;  %v288_v20 = vshrl.u32 %v287_v1, 7  ;;  %s959_s23 = sshll.u32 %s1053_s9, 4  ;;  %s960_s23 = int_to_ptr.vmem [resolvable:$false] %s959_s23 }
  0x78   : > { %779 = vmatpush3.bf16.msra.mxu0 %v778_v10  ;;  %804 = vmatpush3.bf16.msra.mxu1 %v803_v12  ;;  %p962_p12 = scmp.lt.s32.totalorder %s1287_s13, %s960_s23 }
  0x79   : > { %781 = vmatprep.subr.bf16.mxu0 %v780_v14  ;;  %805 = vmatprep.subr.bf16.mxu1 %v1047_v0  ;;  %v289_v21 = vsub.s32 0, %v288_v20  ;;  %v293_v22 = vsub.s32 1, %v288_v20 }
  0x7b   : > { %323 = vrot.lane.b32.xlu1 %v315_v13, %s1049_s25  ;;  %v290_v25 = vrot.slane %v285_v24, %v289_v21  ;;  %v294_v26 = vrot.slane %v285_v24, %v293_v22  ;;  %s961_s25 = scalar_lea.vmem %s960_s23, 256 }
  0x7c   : > { %783 = vmatpush3.bf16.msra.mxu0 %v782_v18  ;;  %807 = vmatpush3.bf16.msra.mxu1 %v806_v19  ;;  %p963_p11 = scmp.lt.s32.totalorder %s961_s25, %s955_s18 }
  0x7e   : > { %p964_p0 = por %p963_p11, %p962_p12 }
  0x80   : > { %p965_p5 = pnand %p964_p0, %p958_p8 }
  0xcf   : > { %v271_v23 = vpop.permute.xlu0 %270  ;;  %v277_v27 = vpop.permute.xlu1 %276 }
  0xd0   : > { %v280_v0 = vsel %vm279_vm1, %v1246_v4, %v271_v23 }
  0xd3   : > { %v274_v28 = vpop.permute.xlu0 %273 }
  0xd4   : > { %v282_v29 = vsel %vm281_vm2, %v280_v0, %v274_v28 }
  0xd5   : > { %v284_v30 = vsel %vm283_vm3, %v282_v29, %v277_v27 }
  0xd6   : > { %v297_v31 = vsub.f32 %v284_v30, %v290_v25  ;;  %v298_v32 = vsub.f32 %v284_v30, %v294_v26 }
  0xd8   : > { %v299_v33 = vmul.f32 %v297_v31, %v297_v31  ;;  %v300_v34 = vmul.f32 %v298_v32, %v298_v32 }
  0xda   : > { %v301_v35 = vsub.f32 0.0, %v299_v33  ;;  %v302_v36 = vsub.f32 0.0, %v300_v34 }
  0xdc   : > { %v303_v37 = vmul.f32 1.442695, %v301_v35  ;;  %v305_v38 = vmul.f32 1.442695, %v302_v36 }
  0xde   : > { %893 = vpow2.f32 %v303_v37 }
  0xdf   : > { %895 = vpow2.f32 %v305_v38 }
  0xe8   : > { %v894_v39 = vpop.eup %893 }
  0xe9   : > { %v896_v40 = vpop.eup %895  ;;  %v318_v4 = vpop.permute.xlu1 %317 }
  0xea   : > { %v326_v41 = vsel %vm279_vm1, %v315_v13, %v318_v4  ;;  %452 = vmatprep.mubr.f32.mxu0 %v896_v40  ;;  %v321_v42 = vpop.permute.xlu0 %320 }
  0xeb   : > { %453 = vmatmul.mubr.f32.vlgmr.msra.gmra.mrb[0].mxu0 %v894_v39  ;;  %v327_v43 = vsel %vm281_vm2, %v326_v41, %v321_v42 }
  0xed   : > { %v324_v44 = vpop.permute.xlu1 %323 }
  0xee   : > { %v328_v45 = vsel %vm283_vm3, %v327_v43, %v324_v44 }
  0xef   : > { %750 = vmatmul.mubr.f32.vlgmr.msra.gmra.mrb[0].mxu1 %v328_v45 }
 0x1be   : > { %v697_v46 = vpop.f32.mrb[0].mxu0 }
 0x1bf   : > { %v698_v47 = vpop.f32.mrb[1].mxu0 }
 0x1c0   : > { %v699_v49 = vadd.f32 %v698_v47, %v697_v46 }
 0x1c2   : > { %v455_v50 = vadd.f32 %v699_v49, %v660_v48  ;;  %v524_v51 = vpop.f32.mrb[0].mxu1 }
 0x1c3   : > { %v751_v52 = vpop.f32.mrb[1].mxu1 }
 0x1c4   : > { %v525_v53 = vadd.f32 %v524_v51, %v455_v50 }
 0x1c6   : > { %528 = vst [vmem:[%s259_s29] sm:$0xff] %v525_v53 }
 0x1c7   : > { %968 = shalt.err (!%p965_p5)
}
 0x1c8   : > { %s969_s6 = scalar_lea.hbm %s1285_s11, 128  ;;  %s973_s21 = scalar_lea.hbm %s1338_s4, 256 }
 0x1c9   : > { %p970_p9 = scmp.ne.s32.totalorder %s1285_s11, %s969_s6  ;;  %p974_p7 = scmp.lt.u32.totalorder %s1285_s11, %s1338_s4 }
 0x1ca   : > { %p975_p3 = scmp.lt.u32.totalorder %s973_s21, %s969_s6  ;;  %p977_p4 = scmp.lt.u32.totalorder %s969_s6, %s1285_s11 }
 0x1cb   : > { %p971_p1 = pnand %p970_p9, %p1175_p10 }
 0x1cc   : > { %p976_p13 = por %p975_p3, %p974_p7 }
 0x1cd   : > { %p972_p2 = pneg %p971_p1 }
 0x1ce   : > { %p978_p6 = por %p977_p4, %p976_p13 }
 0x1d0   : > { %p979_p8 = pnand %p978_p6, %p972_p2 }
 0x1d2   : > { %982 = shalt.err (!%p979_p8)
}
 0x1d3   : > { %814 = dma.vmem_to_hbm [thread:$0]  (%p1175_p10), %s1287_s13, 128, %s1285_s11, %s530_s7  }
 0x1d4 PF: > { %s556_s12 = sand.u32 1, %s1021_s15   ;;  %p1356_p12 = scmp.ne.s32.totalorder %s1346_s26, 0 }
 0x1d5   : > { %p1357_p11 = scmp.ge.s32.totalorder %s1041_s20, 2  ;;  %s557_s29 = scalar_lea.sflag [#allocation5], %s556_s12 }
 0x1d7   : > { %p825_p0 = pnand %p1357_p11, %p1356_p12 }
 0x1d9   : > { %1016 = dma.done.wait (!%p825_p0), %s557_s29, 128  }
 0x1da   : > { %1018 = vsyncadd (!%p825_p0), %s557_s29, 4294967168  ;;  %s21_s20 = sadd.s32 1, %s1041_s20   ;;  %s1358_s15 = smov %s1025_s16 }
 0x1db   : > { %p18_p5 = scmp.ge.s32.totalorder %s21_s20, 4   ;;  %s1359_s16 = smov %s1029_s17 }
 0x1dc   : > { %s1360_s17 = smov %s1184_s10  ;;  %s1361_s18 = smov %s1037_s19 }
 0x1dd   : > { %s1362_s19 = smov %s1364_s5  ;;  %20 = sbr.rel (!%p18_p5) target bundleno = 7 (0x7), region = 93 }
 0x1e4   :  { %562 = vsyncpa [#allocation4], 1 }
 0x1e5   :  { %564 = vsyncpa [#allocation4 + $0x1], 1 }
 0x1e6   :  { %565 = vsyncpa [#allocation7], 1 }
 0x1e7   :  { %566 = vsyncpa [#allocation5], 1 }
 0x1e8   :  { %568 = vsyncpa [#allocation5 + $0x1], 1 }

</bundles_post_ra>
